<compile_context>
chip_gen: v7x
topology: tpu7x:2x2x1
jax: 0.10.0
libtpu: 0.0.40
codegen_flags: <defaults>
</compile_context>

<pallas_src>
import jax
import jax.numpy as jnp
from jax.experimental import pallas as pl
from jax.experimental.pallas import tpu as pltpu

LANE = 128


def _round_up(n, m):
    return ((n + m - 1) // m) * m


def actor_kernel(s_ref, w1_ref, b1_ref, w2_ref, b2_ref, w3_ref, b3_ref,
                 scale_ref, bias_ref, o_ref):
    """One batch tile: relu(fc1) -> relu(fc2) -> tanh(fc3) * scale + bias."""
    # fc1 + relu  (MXU matmul with f32 accumulation; elementwise kept in f32)
    x = jnp.dot(s_ref[...], w1_ref[...], preferred_element_type=jnp.float32)
    x = jnp.maximum(x + b1_ref[...], 0.0)
    # fc2 + relu  (cast activation to the weight dtype so bf16 path hits bf16 MXU)
    x = jnp.dot(x.astype(w2_ref.dtype), w2_ref[...],
                preferred_element_type=jnp.float32)
    x = jnp.maximum(x + b2_ref[...], 0.0)
    # fc3 + tanh, then rescale to the action range (single fused VPU FMA).
    y = jnp.dot(x.astype(w3_ref.dtype), w3_ref[...],
                preferred_element_type=jnp.float32)
    y = jnp.tanh(y + b3_ref[...])
    o_ref[...] = (y * scale_ref[...] + bias_ref[...]).astype(o_ref.dtype)


def actor_forward(state, params, *, block_b=512, matmul_dtype=None):
    """state: [B, state_dim] f32 -> actions [B, action_dim] f32.

    block_b:      batch tile size (rows per grid step) for large batches.
    matmul_dtype: e.g. jnp.bfloat16 to run the matmuls at bf16 MXU rate on
                  v6e/v7x (f32 accumulation, f32 elementwise). None = all f32.
    """
    w1, b1 = params["w1"], params["b1"]
    w2, b2 = params["w2"], params["b2"]
    w3, b3 = params["w3"], params["b3"]
    scale, bias = params["action_scale"], params["action_bias"]
    action_dim = params["action_dim"]

    B, S = state.shape
    HP = w1.shape[1]   # padded hidden dim (multiple of 128)
    AP = w3.shape[1]   # padded action dim (multiple of 128)

    state_in = state
    if matmul_dtype is not None:
        w1 = w1.astype(matmul_dtype)
        w2 = w2.astype(matmul_dtype)
        w3 = w3.astype(matmul_dtype)
        state_in = state.astype(matmul_dtype)

    # Batch tiling: single tile for small B, otherwise fixed tiles of block_b
    # rows (pad B up so the grid divides evenly; padded rows sliced off below).
    if B <= block_b:
        tb, bp = B, B
    else:
        tb = block_b
        bp = _round_up(B, tb)
    if bp != B:
        state_in = jnp.pad(state_in, ((0, bp - B), (0, 0)))
    grid = (bp // tb,)

    tile_map = lambda i: (i, 0)    # state / output tiles march over the batch
    fixed_map = lambda i: (0, 0)   # weights & vectors stay VMEM-resident

    in_specs = [
        pl.BlockSpec((tb, S), tile_map),
        pl.BlockSpec(w1.shape, fixed_map),
        pl.BlockSpec(b1.shape, fixed_map),
        pl.BlockSpec(w2.shape, fixed_map),
        pl.BlockSpec(b2.shape, fixed_map),
        pl.BlockSpec(w3.shape, fixed_map),
        pl.BlockSpec(b3.shape, fixed_map),
        pl.BlockSpec(scale.shape, fixed_map),
        pl.BlockSpec(bias.shape, fixed_map),
    ]
    out_specs = pl.BlockSpec((tb, AP), tile_map)

    # VMEM budget: resident params + double-buffered state/out tiles + live
    # activations, with 2x headroom, capped comfortably under v7x's 64 MiB.
    def nbytes(a):
        return a.size * a.dtype.itemsize

    resident = sum(nbytes(a) for a in (w1, b1, w2, b2, w3, b3, scale, bias))
    tile_io = 2 * (tb * S * state_in.dtype.itemsize + tb * AP * 4)
    live_act = 4 * tb * HP * 4
    vmem_limit = int(min(max(2 * (resident + tile_io + live_act), 8 << 20),
                         48 << 20))

    cost = pl.CostEstimate(
        flops=2 * bp * (S * HP + HP * HP + HP * AP),
        transcendentals=bp * AP,
        bytes_accessed=resident + nbytes(state_in) + bp * AP * 4,
    )

    out = pl.pallas_call(
        actor_kernel,
        out_shape=jax.ShapeDtypeStruct((bp, AP), jnp.float32),
        grid_spec=pltpu.PrefetchScalarGridSpec(
            num_scalar_prefetch=0,
            grid=grid,
            in_specs=in_specs,
            out_specs=out_specs,
        ),
        compiler_params=pltpu.CompilerParams(
            dimension_semantics=("parallel",),   # megacore sharding on v7x
            vmem_limit_bytes=vmem_limit,
        ),
        cost_estimate=cost,
    )(state_in, w1, b1, w2, b2, w3, b3, scale, bias)

    return out[:B, :action_dim]


def init_params(key, state_dim, action_dim, hidden_dim, action_high, action_low):
    """PyTorch-style uniform init. Weights stored [in, out]; hidden/action dims
    zero-padded to multiples of 128 for lane-dense matmuls and unmasked stores."""
    HP = _round_up(hidden_dim, LANE)
    AP = _round_up(action_dim, LANE)
    ks = jax.random.split(key, 6)

    def linear(kw, kb, fan_in, fan_out):
        bound = 1.0 / float(fan_in) ** 0.5
        w = jax.random.uniform(kw, (fan_in, fan_out), jnp.float32, -bound, bound)
        b = jax.random.uniform(kb, (1, fan_out), jnp.float32, -bound, bound)
        return w, b

    w1, b1 = linear(ks[0], ks[1], state_dim, hidden_dim)
    w2, b2 = linear(ks[2], ks[3], hidden_dim, hidden_dim)
    w3, b3 = linear(ks[4], ks[5], hidden_dim, action_dim)

    action_scale = ((action_high - action_low) / 2.0).astype(jnp.float32).reshape(1, action_dim)
    action_bias = ((action_high + action_low) / 2.0).astype(jnp.float32).reshape(1, action_dim)

    def pad2(a, rows, cols, fill=0.0):
        return jnp.pad(a, ((0, rows - a.shape[0]), (0, cols - a.shape[1])),
                       constant_values=fill)

    return {
        # Padded copies used by the kernel (padding is exact: zero weight cols /
        # rows and zero biases contribute nothing; padded outputs are sliced off).
        "w1": pad2(w1, state_dim, HP),
        "b1": pad2(b1, 1, HP),
        "w2": pad2(w2, HP, HP),
        "b2": pad2(b2, 1, HP),
        "w3": pad2(w3, HP, AP),
        "b3": pad2(b3, 1, AP),
        "action_scale": pad2(action_scale, 1, AP, fill=1.0),
        "action_bias": pad2(action_bias, 1, AP, fill=0.0),
        "action_dim": action_dim,
        # Unpadded copies for the pure-JAX reference.
        "ref": (w1, b1, w2, b2, w3, b3, action_scale, action_bias),
    }


def actor_forward_ref(state, params):
    w1, b1, w2, b2, w3, b3, scale, bias = params["ref"]
    x = jnp.maximum(state @ w1 + b1, 0.0)
    x = jnp.maximum(x @ w2 + b2, 0.0)
    return jnp.tanh(x @ w3 + b3) * scale + bias


if __name__ == "__main__":
    # Small, module-consistent shapes.
    state_dim, action_dim, hidden_dim = 16, 4, 32

    key = jax.random.PRNGKey(0)
    k_state, k_params, k_big = jax.random.split(key, 3)

    action_high = jnp.linspace(1.0, 2.0, action_dim, dtype=jnp.float32)
    action_low = -jnp.linspace(0.5, 1.5, action_dim, dtype=jnp.float32)

    params = init_params(k_params, state_dim, action_dim, hidden_dim,
                         action_high, action_low)

    # 1) Small single-tile batch (f32 path), tight tolerance.
    B = 8
    state = jax.random.normal(k_state, (B, state_dim), dtype=jnp.float32)
    out = jax.block_until_ready(actor_forward(state, params))
    ref = actor_forward_ref(state, params)
    assert out.shape == (B, action_dim)
    assert jnp.allclose(out, ref, atol=1e-5, rtol=1e-5), "f32 mismatch vs JAX reference"

    # 2) Multi-tile batch grid (exercises resident weights + pipelined tiles).
    B2 = 64
    state2 = jax.random.normal(k_big, (B2, state_dim), dtype=jnp.float32)
    out2 = jax.block_until_ready(actor_forward(state2, params, block_b=16))
    ref2 = actor_forward_ref(state2, params)
    assert out2.shape == (B2, action_dim)
    assert jnp.allclose(out2, ref2, atol=1e-5, rtol=1e-5), "tiled f32 mismatch vs reference"

    # 3) bf16 matmul path (v6e/v7x MXU); f32 accumulation + f32 elementwise.
    out_bf16 = jax.block_until_ready(
        actor_forward(state2, params, block_b=16, matmul_dtype=jnp.bfloat16))
    assert out_bf16.shape == (B2, action_dim)
    assert jnp.allclose(out_bf16, ref2, atol=3e-2, rtol=3e-2), "bf16 mismatch vs reference"

    print("KERNEL_OK")
</pallas_src>

<mosaic_0001>
module attributes {stable_mosaic.version = 11 : i64} {
  func.func @actor_kernel(%arg0: i32, %arg1: memref<8x16xf32, #tpu.memory_space<vmem>>, %arg2: memref<16x128xf32, #tpu.memory_space<vmem>>, %arg3: memref<1x128xf32, #tpu.memory_space<vmem>>, %arg4: memref<128x128xf32, #tpu.memory_space<vmem>>, %arg5: memref<1x128xf32, #tpu.memory_space<vmem>>, %arg6: memref<128x128xf32, #tpu.memory_space<vmem>>, %arg7: memref<1x128xf32, #tpu.memory_space<vmem>>, %arg8: memref<1x128xf32, #tpu.memory_space<vmem>>, %arg9: memref<1x128xf32, #tpu.memory_space<vmem>>, %arg10: memref<8x128xf32, #tpu.memory_space<vmem>>) attributes {dimension_semantics = [#tpu.dimension_semantics<parallel>], iteration_bounds = array<i64: 1>, scalar_prefetch = 0 : i64, scratch_operands = 0 : i64, tpu.core_type = #tpu.core_type<tc>, window_params = [{transform_indices = @transform_0, window_bounds = array<i64: 8, 16>}, {pipeline_mode = #tpu.pipeline_mode<synchronous>, transform_indices = @transform_1, window_bounds = array<i64: 16, 128>}, {pipeline_mode = #tpu.pipeline_mode<synchronous>, transform_indices = @transform_2, window_bounds = array<i64: 1, 128>}, {pipeline_mode = #tpu.pipeline_mode<synchronous>, transform_indices = @transform_3, window_bounds = array<i64: 128, 128>}, {pipeline_mode = #tpu.pipeline_mode<synchronous>, transform_indices = @transform_4, window_bounds = array<i64: 1, 128>}, {pipeline_mode = #tpu.pipeline_mode<synchronous>, transform_indices = @transform_5, window_bounds = array<i64: 128, 128>}, {pipeline_mode = #tpu.pipeline_mode<synchronous>, transform_indices = @transform_6, window_bounds = array<i64: 1, 128>}, {pipeline_mode = #tpu.pipeline_mode<synchronous>, transform_indices = @transform_7, window_bounds = array<i64: 1, 128>}, {pipeline_mode = #tpu.pipeline_mode<synchronous>, transform_indices = @transform_8, window_bounds = array<i64: 1, 128>}, {transform_indices = @transform_9, window_bounds = array<i64: 8, 128>}]} {
    %c0 = arith.constant 0 : index
    %c0_0 = arith.constant 0 : index
    %0 = vector.load %arg1[%c0, %c0_0] : memref<8x16xf32, #tpu.memory_space<vmem>>, vector<8x16xf32>
    %c0_1 = arith.constant 0 : index
    %c0_2 = arith.constant 0 : index
    %1 = vector.load %arg2[%c0_1, %c0_2] : memref<16x128xf32, #tpu.memory_space<vmem>>, vector<16x128xf32>
    %cst = arith.constant dense<0.000000e+00> : vector<8x128xf32>
    %2 = tpu.matmul %0, %1, %cst {dimension_numbers = #tpu.dot_dimension_numbers<[1], [0], [0], [1], [0, 0, 1, 1], [], []>} : vector<8x16xf32>, vector<16x128xf32>, vector<8x128xf32> -> vector<8x128xf32>
    %c0_3 = arith.constant 0 : index
    %c0_4 = arith.constant 0 : index
    %3 = vector.load %arg3[%c0_3, %c0_4] : memref<1x128xf32, #tpu.memory_space<vmem>>, vector<1x128xf32>
    %4 = vector.broadcast %3 : vector<1x128xf32> to vector<8x128xf32>
    %5 = arith.addf %2, %4 : vector<8x128xf32>
    %cst_5 = arith.constant 0.000000e+00 : f32
    %6 = vector.broadcast %cst_5 : f32 to vector<8x128xf32>
    %7 = arith.maximumf %5, %6 : vector<8x128xf32>
    %c0_6 = arith.constant 0 : index
    %c0_7 = arith.constant 0 : index
    %8 = vector.load %arg4[%c0_6, %c0_7] : memref<128x128xf32, #tpu.memory_space<vmem>>, vector<128x128xf32>
    %cst_8 = arith.constant dense<0.000000e+00> : vector<8x128xf32>
    %9 = tpu.matmul %7, %8, %cst_8 {dimension_numbers = #tpu.dot_dimension_numbers<[1], [0], [0], [1], [0, 0, 1, 1], [], []>} : vector<8x128xf32>, vector<128x128xf32>, vector<8x128xf32> -> vector<8x128xf32>
    %c0_9 = arith.constant 0 : index
    %c0_10 = arith.constant 0 : index
    %10 = vector.load %arg5[%c0_9, %c0_10] : memref<1x128xf32, #tpu.memory_space<vmem>>, vector<1x128xf32>
    %11 = vector.broadcast %10 : vector<1x128xf32> to vector<8x128xf32>
    %12 = arith.addf %9, %11 : vector<8x128xf32>
    %cst_11 = arith.constant 0.000000e+00 : f32
    %13 = vector.broadcast %cst_11 : f32 to vector<8x128xf32>
    %14 = arith.maximumf %12, %13 : vector<8x128xf32>
    %c0_12 = arith.constant 0 : index
    %c0_13 = arith.constant 0 : index
    %15 = vector.load %arg6[%c0_12, %c0_13] : memref<128x128xf32, #tpu.memory_space<vmem>>, vector<128x128xf32>
    %cst_14 = arith.constant dense<0.000000e+00> : vector<8x128xf32>
    %16 = tpu.matmul %14, %15, %cst_14 {dimension_numbers = #tpu.dot_dimension_numbers<[1], [0], [0], [1], [0, 0, 1, 1], [], []>} : vector<8x128xf32>, vector<128x128xf32>, vector<8x128xf32> -> vector<8x128xf32>
    %c0_15 = arith.constant 0 : index
    %c0_16 = arith.constant 0 : index
    %17 = vector.load %arg7[%c0_15, %c0_16] : memref<1x128xf32, #tpu.memory_space<vmem>>, vector<1x128xf32>
    %18 = vector.broadcast %17 : vector<1x128xf32> to vector<8x128xf32>
    %19 = arith.addf %16, %18 : vector<8x128xf32>
    %20 = math.tanh %19 : vector<8x128xf32>
    %c0_17 = arith.constant 0 : index
    %c0_18 = arith.constant 0 : index
    %21 = vector.load %arg8[%c0_17, %c0_18] : memref<1x128xf32, #tpu.memory_space<vmem>>, vector<1x128xf32>
    %22 = vector.broadcast %21 : vector<1x128xf32> to vector<8x128xf32>
    %23 = arith.mulf %20, %22 : vector<8x128xf32>
    %c0_19 = arith.constant 0 : index
    %c0_20 = arith.constant 0 : index
    %24 = vector.load %arg9[%c0_19, %c0_20] : memref<1x128xf32, #tpu.memory_space<vmem>>, vector<1x128xf32>
    %25 = vector.broadcast %24 : vector<1x128xf32> to vector<8x128xf32>
    %26 = arith.addf %23, %25 : vector<8x128xf32>
    %c0_21 = arith.constant 0 : index
    %c0_22 = arith.constant 0 : index
    %27 = vector.load %arg10[%c0_21, %c0_22] : memref<8x128xf32, #tpu.memory_space<vmem>>, vector<8x128xf32>
    tpu.vector_store %arg10[%c0_21, %c0_22], %26 {strides = array<i32>} : memref<8x128xf32, #tpu.memory_space<vmem>>, vector<8x128xf32>,
    return
  }
  func.func @transform_0(%arg0: i32) -> (i32, i32) {
    %c0_i32 = arith.constant 0 : i32
    %c0_i32_0 = arith.constant 0 : i32
    return %arg0, %c0_i32 : i32, i32
  }
  func.func @transform_1(%arg0: i32) -> (i32, i32) {
    %c0_i32 = arith.constant 0 : i32
    %c0_i32_0 = arith.constant 0 : i32
    %c0_i32_1 = arith.constant 0 : i32
    return %c0_i32, %c0_i32_0 : i32, i32
  }
  func.func @transform_2(%arg0: i32) -> (i32, i32) {
    %c0_i32 = arith.constant 0 : i32
    %c0_i32_0 = arith.constant 0 : i32
    %c0_i32_1 = arith.constant 0 : i32
    return %c0_i32, %c0_i32_0 : i32, i32
  }
  func.func @transform_3(%arg0: i32) -> (i32, i32) {
    %c0_i32 = arith.constant 0 : i32
    %c0_i32_0 = arith.constant 0 : i32
    %c0_i32_1 = arith.constant 0 : i32
    return %c0_i32, %c0_i32_0 : i32, i32
  }
  func.func @transform_4(%arg0: i32) -> (i32, i32) {
    %c0_i32 = arith.constant 0 : i32
    %c0_i32_0 = arith.constant 0 : i32
    %c0_i32_1 = arith.constant 0 : i32
    return %c0_i32, %c0_i32_0 : i32, i32
  }
  func.func @transform_5(%arg0: i32) -> (i32, i32) {
    %c0_i32 = arith.constant 0 : i32
    %c0_i32_0 = arith.constant 0 : i32
    %c0_i32_1 = arith.constant 0 : i32
    return %c0_i32, %c0_i32_0 : i32, i32
  }
  func.func @transform_6(%arg0: i32) -> (i32, i32) {
    %c0_i32 = arith.constant 0 : i32
    %c0_i32_0 = arith.constant 0 : i32
    %c0_i32_1 = arith.constant 0 : i32
    return %c0_i32, %c0_i32_0 : i32, i32
  }
  func.func @transform_7(%arg0: i32) -> (i32, i32) {
    %c0_i32 = arith.constant 0 : i32
    %c0_i32_0 = arith.constant 0 : i32
    %c0_i32_1 = arith.constant 0 : i32
    return %c0_i32, %c0_i32_0 : i32, i32
  }
  func.func @transform_8(%arg0: i32) -> (i32, i32) {
    %c0_i32 = arith.constant 0 : i32
    %c0_i32_0 = arith.constant 0 : i32
    %c0_i32_1 = arith.constant 0 : i32
    return %c0_i32, %c0_i32_0 : i32, i32
  }
  func.func @transform_9(%arg0: i32) -> (i32, i32) {
    %c0_i32 = arith.constant 0 : i32
    %c0_i32_0 = arith.constant 0 : i32
    return %arg0, %c0_i32 : i32, i32
  }
}

</mosaic_0001>

<bundles_post_ra>
// kernel: tpu_custom_call.1
= control target key start
LH: loop header
LB: loop body
LE: loop exit
PB: predicated region body
PF: predicated region fallthrough
CT: control target
= control target key end

     0   :  { %14 = vsyncpa [#allocation3], 0  ;;  %s858_s0 = inlined_call_operand.hbm [shape: f32[8,16], index: 0, kind: input, shape index: {}]   ;;  %s859_s1 = inlined_call_operand.hbm [shape: f32[16,128], index: 1, kind: input, shape index: {}]   ;;  %s860_s2 = inlined_call_operand.vmem [shape: f32[1,128], index: 2, kind: input, shape index: {}]   ;;  %s861_s3 = inlined_call_operand.hbm [shape: f32[128,128], index: 3, kind: input, shape index: {}]   ;;  %s862_s4 = inlined_call_operand.vmem [shape: f32[1,128], index: 4, kind: input, shape index: {}]   ;;  %s863_s5 = inlined_call_operand.hbm [shape: f32[128,128], index: 5, kind: input, shape index: {}]   ;;  %s864_s6 = inlined_call_operand.vmem [shape: f32[1,128], index: 6, kind: input, shape index: {}]   ;;  %s865_s7 = inlined_call_operand.vmem [shape: f32[1,128], index: 7, kind: input, shape index: {}]   ;;  %s866_s8 = inlined_call_operand.vmem [shape: f32[1,128], index: 8, kind: input, shape index: {}]   ;;  %s867_s9 = inlined_call_operand.hbm [shape: f32[8,128], index: 9, kind: output, shape index: {}]  }
   0x1   :  { %15 = vsyncpa [#allocation6], 0 }
   0x2   :  { %16 = vsyncpa [#allocation9], 0 }
   0x3   :  { %17 = vsyncpa [#allocation4], 0  ;;  %s694_s30 = smov [#allocation5]   ;;  %s576_s13 = scalar_lea.hbm %s859_s1, 256 }
   0x4   :  { %s33_s10 = sshll.u32 %s694_s30, 4  ;;  %p577_p0 = scmp.ne.s32.totalorder %s859_s1, %s576_s13  ;;  %s34_s10 = int_to_ptr.vmem [resolvable:$true] %s33_s10 }
   0x5   :  { %p580_p1 = scmp.lt.u32.totalorder %s576_s13, %s859_s1 }
   0x7   :  { %p582_p2 = pnand %p580_p1, %p577_p0 }
   0x9   :  { %585 = shalt.err (!%p582_p2)
}
   0xa   :  { %s586_s18 = scalar_lea.vmem %s34_s10, 256  ;;  %p591_p4 = scmp.lt.s32.totalorder %s34_s10, %s34_s10 }
   0xb   :  { %p587_p3 = scmp.ne.s32.totalorder %s34_s10, %s586_s18  ;;  %p592_p5 = scmp.lt.s32.totalorder %s586_s18, %s586_s18 }
   0xd   :  { %p593_p6 = por %p592_p5, %p591_p4 }
   0xf   :  { %p594_p7 = pnand %p593_p6, %p587_p3 }
  0x11   :  { %597 = shalt.err (!%p594_p7)
}
  0x12   :  { %s695_s19 = smov 128   ;;  %s696_s20 = smov 8  }
  0x13   :  { %39 = dma.hbm_to_vmem [thread:$0]  %s859_s1, 256, %s34_s10, [#allocation6], %s695_s19, %s695_s19, %s696_s20  }
  0x14   :  { %s697_s23 = smov [#allocation2]   ;;  %s698_s25 = smov [#allocation7]  }
  0x15   :  { %s24_s24 = sshll.u32 %s697_s23, 4  ;;  %s47_s26 = sshll.u32 %s698_s25, 4  ;;  %s25_s24 = int_to_ptr.vmem [resolvable:$true] %s24_s24  ;;  %s48_s26 = int_to_ptr.vmem [resolvable:$true] %s47_s26 }
  0x16   :  { %s598_s29 = scalar_lea.hbm %s858_s0, 128 }
  0x17   :  { %p599_p8 = scmp.ne.s32.totalorder %s858_s0, %s598_s29  ;;  %p602_p9 = scmp.lt.u32.totalorder %s598_s29, %s858_s0 }
  0x19   :  { %p604_p10 = pnand %p602_p9, %p599_p8 }
  0x1b   :  { %607 = shalt.err (!%p604_p10)
}
  0x1c   :  { %s608_s1 = scalar_lea.vmem %s25_s24, 128  ;;  %p613_p12 = scmp.lt.s32.totalorder %s25_s24, %s25_s24 }
  0x1d   :  { %p609_p11 = scmp.ne.s32.totalorder %s25_s24, %s608_s1  ;;  %p614_p13 = scmp.lt.s32.totalorder %s608_s1, %s608_s1 }
  0x1f   :  { %p615_p0 = por %p614_p13, %p613_p12 }
  0x21   :  { %p616_p1 = pnand %p615_p0, %p609_p11 }
  0x23   :  { %619 = shalt.err (!%p616_p1)
}
  0x24   :  { %27 = dma.hbm_to_vmem [thread:$0]  %s858_s0, 128, %s25_s24, [#allocation3]  }
  0x25   :  { %s620_s17 = scalar_lea.hbm %s861_s3, 2048 }
  0x26   :  { %p621_p2 = scmp.ne.s32.totalorder %s861_s3, %s620_s17  ;;  %p624_p3 = scmp.lt.u32.totalorder %s620_s17, %s861_s3 }
  0x28   :  { %p626_p4 = pnand %p624_p3, %p621_p2 }
  0x2a   :  { %629 = shalt.err (!%p626_p4)
}
  0x2b   :  { %s630_s25 = scalar_lea.vmem %s48_s26, 2048  ;;  %p635_p6 = scmp.lt.s32.totalorder %s48_s26, %s48_s26 }
  0x2c   :  { %p631_p5 = scmp.ne.s32.totalorder %s48_s26, %s630_s25  ;;  %p636_p7 = scmp.lt.s32.totalorder %s630_s25, %s630_s25 }
  0x2e   :  { %p637_p8 = por %p636_p7, %p635_p6 }
  0x30   :  { %p638_p9 = pnand %p637_p8, %p631_p5 }
  0x32   :  { %641 = shalt.err (!%p638_p9)
}
  0x33   :  { %53 = dma.hbm_to_vmem [thread:$0]  %s861_s3, 2048, %s48_s26, [#allocation6], %s695_s19, %s695_s19, %s696_s20  }
  0x34   :  { %s699_s27 = smov [#allocation8]   ;;  %s642_s11 = scalar_lea.hbm %s863_s5, 2048 }
  0x35   :  { %s61_s28 = sshll.u32 %s699_s27, 4  ;;  %p643_p10 = scmp.ne.s32.totalorder %s863_s5, %s642_s11  ;;  %s62_s28 = int_to_ptr.vmem [resolvable:$true] %s61_s28 }
  0x36   :  { %p646_p11 = scmp.lt.u32.totalorder %s642_s11, %s863_s5 }
  0x38   :  { %p648_p12 = pnand %p646_p11, %p643_p10 }
  0x3a   :  { %651 = shalt.err (!%p648_p12)
}
  0x3b   :  { %s652_s14 = scalar_lea.vmem %s62_s28, 2048  ;;  %p657_p0 = scmp.lt.s32.totalorder %s62_s28, %s62_s28 }
  0x3c   :  { %p653_p13 = scmp.ne.s32.totalorder %s62_s28, %s652_s14  ;;  %p658_p1 = scmp.lt.s32.totalorder %s652_s14, %s652_s14 }
  0x3e   :  { %p659_p2 = por %p658_p1, %p657_p0 }
  0x40   :  { %p660_p3 = pnand %p659_p2, %p653_p13 }
  0x42   :  { %663 = shalt.err (!%p660_p3)
}
  0x43   :  { %67 = dma.hbm_to_vmem [thread:$0]  %s863_s5, 2048, %s62_s28, [#allocation9], %s695_s19, %s695_s19, %s696_s20  }
  0x44   :  { %686 = dma.done.wait [#allocation3], 128  }
  0x45   :  { %687 = vsyncadd [#allocation3], 4294967168 }
  0x46   :  { %688 = dma.done.wait [#allocation6], 2304  }
  0x47   :  { %689 = vsyncadd [#allocation6], 4294964992 }
  0x48   :  { %690 = dma.done.wait [#allocation9], 2048  }
  0x49   :  { %691 = vsyncadd [#allocation9], 4294965248  ;;  %v700_v0 = vmov 0.0|0.0   ;;  %vm701_vm0 = vmmov 0   ;;  %v702_v1 = vmov 0.0   ;;  %v87_v2 = vld [vmem:[#allocation5] sm:$0xff] }
  0x4a   :  { %513 = vmatprep.subr.bf16.mxu0 %v700_v0  ;;  %440 = vmatprep.mubr.msk.f32.mxu0 %vm701_vm0, %v702_v1  ;;  %v88_v3 = vld [vmem:[#allocation5 + $0x8] sm:$0xff]  ;;  %v171_v5 = vld [vmem:[#allocation7] sm:$0xff]  ;;  %v172_v6 = vld [vmem:[#allocation7 + $0x8] sm:$0xff]  ;;  %vm96_vm1 = vcmask 130048   ;;  %s703_s22 = smov [#allocation10]  }
  0x4b   :  { %516 = vmatprep.subr.bf16.mxu1 %v700_v0  ;;  %475 = vmatprep.mubr.msk.f32.mxu1 %vm701_vm0, %v702_v1  ;;  %v514_v4 = vpack.c.bf16 %v88_v3, %v87_v2  ;;  %v173_v7 = vld [vmem:[#allocation7 + $0x10] sm:$0xff]  ;;  %v517_v8 = vpack.c.bf16 %v172_v6, %v171_v5  ;;  %v174_v9 = vld [vmem:[#allocation7 + $0x18] sm:$0xff]  ;;  %v86_v10 = vld [vmem:[#allocation2] sm:$0xff]  ;;  %s382_s23 = sshll.u32 %s703_s22, 4  ;;  %s383_s23 = int_to_ptr.vmem [resolvable:$true] %s382_s23 }
  0x4c   :  { %v520_v11 = vpack.c.bf16 %v174_v9, %v173_v7  ;;  %v175_v12 = vld [vmem:[#allocation7 + $0x20] sm:$0xff]  ;;  %v176_v13 = vld [vmem:[#allocation7 + $0x28] sm:$0xff]  ;;  %v177_v15 = vld [vmem:[#allocation7 + $0x30] sm:$0xff]  ;;  %p669_p5 = scmp.lt.s32.totalorder %s383_s23, %s383_s23 }
  0x4d   :  { %515 = vmatpush3.bf16.msra.mxu0 %v514_v4  ;;  %518 = vmatpush3.bf16.msra.mxu1 %v517_v8  ;;  %v523_v14 = vpack.c.bf16 %v176_v13, %v175_v12  ;;  %v178_v16 = vld [vmem:[#allocation7 + $0x38] sm:$0xff]  ;;  %v179_v18 = vld [vmem:[#allocation7 + $0x40] sm:$0xff]  ;;  %v180_v19 = vld [vmem:[#allocation7 + $0x48] sm:$0xff] }
  0x4e   :  { %540 = vmatprep.subr.bf16.mxu0 %v700_v0  ;;  %519 = vmatprep.subr.bf16.mxu1 %v700_v0  ;;  %v526_v17 = vpack.c.bf16 %v178_v16, %v177_v15  ;;  %v529_v20 = vpack.c.bf16 %v180_v19, %v179_v18  ;;  %v181_v21 = vld [vmem:[#allocation7 + $0x50] sm:$0xff]  ;;  %v182_v22 = vld [vmem:[#allocation7 + $0x58] sm:$0xff]  ;;  %v183_v24 = vld [vmem:[#allocation7 + $0x60] sm:$0xff] }
  0x4f   :  { %v532_v23 = vpack.c.bf16 %v182_v22, %v181_v21  ;;  %v184_v25 = vld [vmem:[#allocation7 + $0x68] sm:$0xff]  ;;  %v185_v27 = vld [vmem:[#allocation7 + $0x70] sm:$0xff]  ;;  %v186_v28 = vld [vmem:[#allocation7 + $0x78] sm:$0xff] }
  0x50   :  { %441 = vmatmul.mubr.msk.f32.vlgmr.msra.gmra.mrb[0].mxu0 %vm96_vm1, %v86_v10  ;;  %v535_v26 = vpack.c.bf16 %v184_v25, %v183_v24  ;;  %v538_v29 = vpack.c.bf16 %v186_v28, %v185_v27  ;;  %v265_v30 = vld [vmem:[#allocation8] sm:$0xff]  ;;  %v266_v31 = vld [vmem:[#allocation8 + $0x8] sm:$0xff]  ;;  %v267_v32 = vld [vmem:[#allocation8 + $0x10] sm:$0xff] }
  0x51   :  { %510 = vmatprep.mubr.msk.f32.mxu0 %vm701_vm0, %v702_v1  ;;  %521 = vmatpush3.bf16.msra.mxu1 %v520_v11  ;;  %v541_v33 = vpack.c.bf16 %v266_v31, %v265_v30  ;;  %v268_v34 = vld [vmem:[#allocation8 + $0x18] sm:$0xff]  ;;  %v269_v36 = vld [vmem:[#allocation8 + $0x20] sm:$0xff]  ;;  %v270_v37 = vld [vmem:[#allocation8 + $0x28] sm:$0xff] }
  0x52   :  { %522 = vmatprep.subr.bf16.mxu1 %v700_v0  ;;  %v544_v35 = vpack.c.bf16 %v268_v34, %v267_v32  ;;  %v547_v38 = vpack.c.bf16 %v270_v37, %v269_v36  ;;  %v271_v39 = vld [vmem:[#allocation8 + $0x30] sm:$0xff]  ;;  %v272_v40 = vld [vmem:[#allocation8 + $0x38] sm:$0xff]  ;;  %v273_v42 = vld [vmem:[#allocation8 + $0x40] sm:$0xff] }
  0x53   :  { %542 = vmatpush3.bf16.msra.mxu0 %v541_v33  ;;  %v550_v41 = vpack.c.bf16 %v272_v40, %v271_v39  ;;  %v274_v43 = vld [vmem:[#allocation8 + $0x48] sm:$0xff]  ;;  %v275_v45 = vld [vmem:[#allocation8 + $0x50] sm:$0xff]  ;;  %v276_v46 = vld [vmem:[#allocation8 + $0x58] sm:$0xff] }
  0x54   :  { %543 = vmatprep.subr.bf16.mxu0 %v700_v0  ;;  %v553_v44 = vpack.c.bf16 %v274_v43, %v273_v42  ;;  %v556_v47 = vpack.c.bf16 %v276_v46, %v275_v45  ;;  %v277_v48 = vld [vmem:[#allocation8 + $0x60] sm:$0xff]  ;;  %v278_v49 = vld [vmem:[#allocation8 + $0x68] sm:$0xff]  ;;  %v279_v56 = vld [vmem:[#allocation8 + $0x70] sm:$0xff] }
  0x55   :  { %524 = vmatpush3.bf16.msra.mxu1 %v523_v14  ;;  %v559_v50 = vpack.c.bf16 %v278_v49, %v277_v48  ;;  %v393_v51 = vld [vmem:[%s860_s2] ss:$0 sm:$0xff]  ;;  %v280_v57 = vld [vmem:[#allocation8 + $0x78] sm:$0xff] }
  0x56   :  { %525 = vmatprep.subr.bf16.mxu1 %v700_v0  ;;  %v562_v58 = vpack.c.bf16 %v280_v57, %v279_v56  ;;  %v395_v59 = vld [vmem:[%s862_s4] ss:$0 sm:$0xff] }
  0x57   :  { %545 = vmatpush3.bf16.msra.mxu0 %v544_v35  ;;  %v397_v4 = vld [vmem:[%s865_s7] ss:$0 sm:$0xff] }
  0x58   :  { %546 = vmatprep.subr.bf16.mxu0 %v700_v0  ;;  %v398_v6 = vld [vmem:[%s866_s8] ss:$0 sm:$0xff] }
  0x59   :  { %527 = vmatpush3.bf16.msra.mxu1 %v526_v17 }
  0x5a   :  { %528 = vmatprep.subr.bf16.mxu1 %v700_v0 }
  0x5b   :  { %548 = vmatpush3.bf16.msra.mxu0 %v547_v38 }
  0x5c   :  { %549 = vmatprep.subr.bf16.mxu0 %v700_v0 }
  0x5d   :  { %530 = vmatpush3.bf16.msra.mxu1 %v529_v20 }
  0x5e   :  { %531 = vmatprep.subr.bf16.mxu1 %v700_v0 }
  0x5f   :  { %551 = vmatpush3.bf16.msra.mxu0 %v550_v41 }
  0x60   :  { %552 = vmatprep.subr.bf16.mxu0 %v700_v0 }
  0x61   :  { %533 = vmatpush3.bf16.msra.mxu1 %v532_v23 }
  0x62   :  { %534 = vmatprep.subr.bf16.mxu1 %v700_v0 }
  0x63   :  { %554 = vmatpush3.bf16.msra.mxu0 %v553_v44 }
  0x64   :  { %555 = vmatprep.subr.bf16.mxu0 %v700_v0 }
  0x65   :  { %536 = vmatpush3.bf16.msra.mxu1 %v535_v26 }
  0x66   :  { %537 = vmatprep.subr.bf16.mxu1 %v700_v0 }
  0x67   :  { %557 = vmatpush3.bf16.msra.mxu0 %v556_v47 }
  0x68   :  { %558 = vmatprep.subr.bf16.mxu0 %v700_v0 }
  0x69   :  { %539 = vmatpush3.bf16.msra.mxu1 %v538_v29 }
  0x6b   :  { %560 = vmatpush3.bf16.msra.mxu0 %v559_v50 }
  0x6c   :  { %561 = vmatprep.subr.bf16.mxu0 %v700_v0  ;;  %v396_v0 = vld [vmem:[%s864_s6] ss:$0 sm:$0xff]  ;;  %s664_s6 = scalar_lea.vmem %s383_s23, 128 }
  0x6d   :  { %p665_p4 = scmp.ne.s32.totalorder %s383_s23, %s664_s6  ;;  %p670_p6 = scmp.lt.s32.totalorder %s664_s6, %s664_s6 }
  0x6f   :  { %563 = vmatpush3.bf16.msra.mxu0 %v562_v58  ;;  %p671_p7 = por %p670_p6, %p669_p5 }
  0x71   :  { %p672_p8 = pnand %p671_p7, %p665_p4 }
 0x123   :  { %v166_v52 = vpop.f32.mrb[0].mxu0 }
 0x124   :  { %v167_v53 = vadd.f32 %v393_v51, %v166_v52  ;;  %v442_v54 = vpop.f32.mrb[1].mxu0 }
 0x126   :  { %v170_v55 = vmax.f32 %v167_v53, 0.0 }
 0x128   :  { %476 = vmatmul.mubr.f32.vlgmr.msra.gmra.mrb[0].mxu1 %v170_v55 }
 0x1fb   :  { %v260_v60 = vpop.f32.mrb[0].mxu1 }
 0x1fc   :  { %v261_v61 = vadd.f32 %v395_v59, %v260_v60  ;;  %v477_v62 = vpop.f32.mrb[1].mxu1 }
 0x1fe   :  { %v264_v63 = vmax.f32 %v261_v61, 0.0 }
 0x200   :  { %511 = vmatmul.mubr.f32.vlgmr.msra.gmra.mrb[2].mxu0 %v264_v63 }
 0x2d3   :  { %v354_v1 = vpop.f32.mrb[2].mxu0 }
 0x2d4   :  { %v355_v2 = vadd.f32 %v396_v0, %v354_v1  ;;  %v512_v3 = vpop.f32.mrb[3].mxu0 }
 0x2d6   :  { %574 = vtanh.f32 %v355_v2 }
 0x2e0   :  { %v575_v5 = vpop.eup %574 }
 0x2e1   :  { %v366_v7 = vmul.f32 %v575_v5, %v397_v4 }
 0x2e3   :  { %v374_v8 = vadd.f32 %v398_v6, %v366_v7 }
 0x2e5   :  { %375 = vst [vmem:[#allocation10] sm:$0xff] %v374_v8 }
 0x2e6   :  { %675 = shalt.err (!%p672_p8)
}
 0x2e7   :  { %s676_s0 = scalar_lea.hbm %s867_s9, 128 }
 0x2e8   :  { %p677_p9 = scmp.ne.s32.totalorder %s867_s9, %s676_s0  ;;  %p680_p10 = scmp.lt.u32.totalorder %s676_s0, %s867_s9 }
 0x2ea   :  { %p682_p11 = pnand %p680_p10, %p677_p9 }
 0x2ec   :  { %685 = shalt.err (!%p682_p11)
}
 0x2ed   :  { %385 = dma.vmem_to_hbm [thread:$0]  %s383_s23, 128, %s867_s9, [#allocation4]  }
 0x2ee   :  { %692 = dma.done.wait [#allocation4], 128  }
 0x2ef   :  { %693 = vsyncadd [#allocation4], 4294967168 }
 0x2f0   :  { %389 = vsyncpa [#allocation3], 1 }
 0x2f1   :  { %390 = vsyncpa [#allocation6], 1 }
 0x2f2   :  { %391 = vsyncpa [#allocation9], 1 }
 0x2f3   :  { %392 = vsyncpa [#allocation4], 1 }

</bundles_post_ra>
